<compile_context>
chip_gen: v5e
topology: v5e:2x2
jax: 0.10.0
libtpu: 0.0.40
codegen_flags: <defaults>
</compile_context>

<pallas_src>
import jax
import jax.numpy as jnp
from jax import lax
from jax.experimental import pallas as pl
from jax.experimental.pallas import tpu as pltpu


def _round_up(x, m):
    return (x + m - 1) // m * m


def _choose_tm(M, target):
    """M-tile: big (amortizes per-grid-step overhead), and >= 2 blocks when M
    is large enough so the 'parallel' axis can shard across v7x's 2 TCs."""
    Mp0 = _round_up(M, 8)
    if Mp0 <= 512:
        return Mp0                                   # one small block
    if Mp0 <= target:                                # split into >= 2 blocks
        return _round_up((Mp0 + 1) // 2, 128)
    return target                                    # large M: 256-aligned cap


# ---------------------------------------------------------------------------
# Single-pass matmul + bias kernel:  o = x @ w + b  (fp32 accumulation on MXU)
#   x_ref: (tm, Kp) streamed   w_ref: (Kp, Np) resident   b_ref: (1, Np) resident
# ---------------------------------------------------------------------------
def _patch_linear_kernel(x_ref, w_ref, b_ref, o_ref):
    acc = jnp.dot(x_ref[...], w_ref[...], preferred_element_type=jnp.float32)
    o_ref[...] = (acc + b_ref[...]).astype(o_ref.dtype)


def linear_pallas(x, w, b, *, tm_target=1024, out_dtype=jnp.float32,
                  vmem_limit_bytes=48 * 1024 * 1024, allow_x_fusion=True):
    """y = x @ w + b with a 1-D (M-tiled) Pallas matmul; w/b stay VMEM-resident."""
    M, K = x.shape
    K2, N = w.shape
    assert K == K2 and b.shape == (N,)

    # Pad K / N to lane-friendly sizes. Zero-padded K columns contribute 0;
    # padded N columns (bias padded with 0) are sliced off afterwards.
    Kp = _round_up(K, 128)
    Np = _round_up(N, 128)

    budget = int(0.8 * vmem_limit_bytes)
    resident = 2 * (Kp * Np * w.dtype.itemsize + Np * 4)
    if resident > budget:
        # TODO(synk): tile N (2-D grid) for embed dims too large to keep the
        # weight resident; PatchEmbed's embed_dim (<= ~1280) never needs it.
        raise NotImplementedError("embed_dim too large for resident-weight kernel")

    tm = _choose_tm(M, tm_target)

    def _footprint(tm_):
        return resident + 2 * (tm_ * Kp * x.dtype.itemsize
                               + tm_ * Np * jnp.dtype(out_dtype).itemsize)

    while _footprint(tm) > budget and tm > 128:
        tm = max(128, _round_up(tm // 2, 128))

    Mp = _round_up(M, tm)

    xp = x if (Mp, Kp) == (M, K) else jnp.pad(x, ((0, Mp - M), (0, Kp - K)))
    wp = w if (Kp, Np) == (K, N) else jnp.pad(w, ((0, Kp - K), (0, Np - N)))
    bp = b.astype(jnp.float32).reshape(1, N)
    if Np != N:
        bp = jnp.pad(bp, ((0, 0), (0, Np - N)))

    grid = (Mp // tm,)                       # 1-D grid: stream x once over M
    out = pl.pallas_call(
        _patch_linear_kernel,
        out_shape=jax.ShapeDtypeStruct((Mp, Np), out_dtype),
        grid=grid,
        in_specs=[
            pl.BlockSpec((tm, Kp), lambda i: (i, 0)),    # streamed activation
            pl.BlockSpec((Kp, Np), lambda i: (0, 0)),    # resident weight
            pl.BlockSpec((1, Np), lambda i: (0, 0)),     # resident bias
        ],
        out_specs=pl.BlockSpec((tm, Np), lambda i: (i, 0)),  # lane-dense stores
        compiler_params=pltpu.CompilerParams(
            dimension_semantics=("parallel",),
            vmem_limit_bytes=vmem_limit_bytes,
            allow_input_fusion=([True, False, False] if allow_x_fusion else None),
        ),
    )(xp, wp, bp)

    if (Mp, Np) != (M, N):
        out = out[:M, :N]
    return out


# ---------------------------------------------------------------------------
# PatchEmbed forward: Conv2d(k == stride) as patchify + Pallas matmul, NHWC out
# ---------------------------------------------------------------------------
def patch_embed_forward(x, proj_w, proj_b, *, kernel_size=(16, 16),
                        stride=(16, 16), padding=(0, 0),
                        operand_dtype=jnp.bfloat16, out_dtype=jnp.float32):
    B, C, H, W = x.shape
    D, Cw, kh, kw = proj_w.shape
    assert C == Cw and (kh, kw) == tuple(kernel_size)

    ph, pw = padding
    if ph or pw:
        x = jnp.pad(x, ((0, 0), (0, 0), (ph, ph), (pw, pw)))
        H, W = H + 2 * ph, W + 2 * pw

    sh, sw = stride
    if (kh, kw) != (sh, sw):
        # TODO(synk): overlapping-patch conv (kernel_size != stride) has no
        # patchify fast path here; PatchEmbed's defaults never exercise it.
        raise NotImplementedError("Pallas PatchEmbed requires kernel_size == stride")
    Hp, Wp = H // kh, W // kw

    # Cast BEFORE the patchify transpose: that pass is pure HBM layout work,
    # so bf16 halves its read+write bytes. bf16 operands are MXU-native on
    # v5e/v6e/v7x; accumulation stays fp32 inside the kernel.
    if operand_dtype is not None and x.dtype != operand_dtype:
        x = x.astype(operand_dtype)
    w_mat = proj_w.reshape(D, C * kh * kw).T                 # (C*kh*kw, D)
    if operand_dtype is not None and w_mat.dtype != operand_dtype:
        w_mat = w_mat.astype(operand_dtype)

    # Non-overlapping patchify: (B,C,H,W) -> (B*Hp*Wp, C*kh*kw). Column order
    # (c, ki, kj) matches the flattened Conv2d weight layout (D, C, kh, kw).
    patches = x.reshape(B, C, Hp, kh, Wp, kw)
    patches = patches.transpose(0, 2, 4, 1, 3, 5).reshape(B * Hp * Wp, C * kh * kw)

    out = linear_pallas(patches, w_mat, proj_b, out_dtype=out_dtype)
    # Rows are ordered (b, hp, wp), so this is exactly Conv2d output permuted
    # (0, 2, 3, 1): no post-kernel transpose / HBM round trip.
    return out.reshape(B, Hp, Wp, D)


# ---------------------------------------------------------------------------
# Independent reference (XLA conv) mirroring the torch forward 1:1
# ---------------------------------------------------------------------------
def patch_embed_ref(x, proj_w, proj_b, *, stride=(16, 16), padding=(0, 0)):
    y = lax.conv_general_dilated(
        x, proj_w, window_strides=stride,
        padding=[(padding[0], padding[0]), (padding[1], padding[1])],
        dimension_numbers=("NCHW", "OIHW", "NCHW"),
        precision=lax.Precision.HIGHEST)
    y = y + proj_b[None, :, None, None]
    return jnp.transpose(y, (0, 2, 3, 1))


# ---------------------------------------------------------------------------
if __name__ == "__main__":
    key = jax.random.PRNGKey(0)
    B, C, H, W = 2, 3, 64, 64
    kernel_size = stride = (16, 16)
    padding = (0, 0)
    embed_dim = 256                       # small but lane-dense (multiple of 128)

    k0, k1, k2 = jax.random.split(key, 3)
    x = jax.random.normal(k0, (B, C, H, W), jnp.float32)
    proj_w = jax.random.normal(k1, (embed_dim, C, *kernel_size), jnp.float32) * 0.02
    proj_b = jax.random.normal(k2, (embed_dim,), jnp.float32) * 0.02

    out = patch_embed_forward(x, proj_w, proj_b, kernel_size=kernel_size,
                              stride=stride, padding=padding)
    out = jax.block_until_ready(out)
    assert out.shape == (B, H // kernel_size[0], W // kernel_size[1], embed_dim)

    # Kernel correctness: compare against the same bf16-quantized operands run
    # through XLA's conv (fp32 accumulation) -> only summation order differs.
    x_q = x.astype(jnp.bfloat16).astype(jnp.float32)
    w_q = proj_w.astype(jnp.bfloat16).astype(jnp.float32)
    ref_q = patch_embed_ref(x_q, w_q, proj_b, stride=stride, padding=padding)
    err_q = float(jnp.max(jnp.abs(out - ref_q)))
    assert err_q < 5e-3, f"mismatch vs bf16-operand reference (max abs err {err_q})"

    # End-to-end sanity vs the full-fp32 conv (difference = bf16 operand quantization).
    ref = patch_embed_ref(x, proj_w, proj_b, stride=stride, padding=padding)
    err = float(jnp.max(jnp.abs(out - ref)))
    assert err < 5e-2, f"mismatch vs fp32 reference (max abs err {err})"

    print("KERNEL_OK")
</pallas_src>

<mosaic_0001>
module attributes {stable_mosaic.version = 11 : i64} {
  func.func @_patch_linear_kernel(%arg0: i32, %arg1: memref<32x768xbf16, #tpu.memory_space<vmem>>, %arg2: memref<768x256xbf16, #tpu.memory_space<vmem>>, %arg3: memref<1x256xf32, #tpu.memory_space<vmem>>, %arg4: memref<32x256xf32, #tpu.memory_space<vmem>>) attributes {dimension_semantics = [#tpu.dimension_semantics<parallel>], iteration_bounds = array<i64: 1>, scalar_prefetch = 0 : i64, scratch_operands = 0 : i64, tpu.core_type = #tpu.core_type<tc>, window_params = [{transform_indices = @transform_0, window_bounds = array<i64: 32, 768>}, {pipeline_mode = #tpu.pipeline_mode<synchronous>, transform_indices = @transform_1, window_bounds = array<i64: 768, 256>}, {pipeline_mode = #tpu.pipeline_mode<synchronous>, transform_indices = @transform_2, window_bounds = array<i64: 1, 256>}, {transform_indices = @transform_3, window_bounds = array<i64: 32, 256>}]} {
    %c0 = arith.constant 0 : index
    %c0_0 = arith.constant 0 : index
    %0 = vector.load %arg1[%c0, %c0_0] : memref<32x768xbf16, #tpu.memory_space<vmem>>, vector<32x768xbf16>
    %c0_1 = arith.constant 0 : index
    %c0_2 = arith.constant 0 : index
    %1 = vector.load %arg2[%c0_1, %c0_2] : memref<768x256xbf16, #tpu.memory_space<vmem>>, vector<768x256xbf16>
    %cst = arith.constant dense<0.000000e+00> : vector<32x256xf32>
    %2 = tpu.matmul %0, %1, %cst {dimension_numbers = #tpu.dot_dimension_numbers<[1], [0], [0], [1], [0, 0, 1, 1], [], []>} : vector<32x768xbf16>, vector<768x256xbf16>, vector<32x256xf32> -> vector<32x256xf32>
    %c0_3 = arith.constant 0 : index
    %c0_4 = arith.constant 0 : index
    %3 = vector.load %arg3[%c0_3, %c0_4] : memref<1x256xf32, #tpu.memory_space<vmem>>, vector<1x256xf32>
    %4 = vector.broadcast %3 : vector<1x256xf32> to vector<32x256xf32>
    %5 = arith.addf %2, %4 : vector<32x256xf32>
    %c0_5 = arith.constant 0 : index
    %c0_6 = arith.constant 0 : index
    %6 = vector.load %arg4[%c0_5, %c0_6] : memref<32x256xf32, #tpu.memory_space<vmem>>, vector<32x256xf32>
    tpu.vector_store %arg4[%c0_5, %c0_6], %5 {strides = array<i32>} : memref<32x256xf32, #tpu.memory_space<vmem>>, vector<32x256xf32>,
    return
  }
  func.func @transform_0(%arg0: i32) -> (i32, i32) {
    %c0_i32 = arith.constant 0 : i32
    %c0_i32_0 = arith.constant 0 : i32
    return %arg0, %c0_i32 : i32, i32
  }
  func.func @transform_1(%arg0: i32) -> (i32, i32) {
    %c0_i32 = arith.constant 0 : i32
    %c0_i32_0 = arith.constant 0 : i32
    %c0_i32_1 = arith.constant 0 : i32
    return %c0_i32, %c0_i32_0 : i32, i32
  }
  func.func @transform_2(%arg0: i32) -> (i32, i32) {
    %c0_i32 = arith.constant 0 : i32
    %c0_i32_0 = arith.constant 0 : i32
    %c0_i32_1 = arith.constant 0 : i32
    return %c0_i32, %c0_i32_0 : i32, i32
  }
  func.func @transform_3(%arg0: i32) -> (i32, i32) {
    %c0_i32 = arith.constant 0 : i32
    %c0_i32_0 = arith.constant 0 : i32
    return %arg0, %c0_i32 : i32, i32
  }
}

</mosaic_0001>

<bundles_post_ra>
// kernel: tpu_custom_call.1
= control target key start
LH: loop header
LB: loop body
LE: loop exit
PB: predicated region body
PF: predicated region fallthrough
CT: control target
= control target key end

     0   :  { %8 = vsyncpa [#allocation3], 0  ;;  %s1704_s0 = inlined_call_operand.hbm [shape: bf16[32,768], index: 0, kind: input, shape index: {}]   ;;  %s1705_s1 = inlined_call_operand.hbm [shape: bf16[768,256], index: 1, kind: input, shape index: {}]   ;;  %s1706_s2 = inlined_call_operand.hbm [shape: f32[1,256], index: 2, kind: input, shape index: {}]   ;;  %s1707_s3 = inlined_call_operand.hbm [shape: f32[32,256], index: 3, kind: output, shape index: {}]  }
   0x1   :  { %9 = vsyncpa [#allocation6], 0  ;;  %s28_s14 = sshll.u32 %s1705_s1, 4  ;;  %s29_s14 = int_to_ptr.hbm [resolvable:$true] %s28_s14 }
   0x2   :  { %10 = vsyncpa [#allocation4], 0  ;;  %s1622_s15 = smov [#allocation5]   ;;  %s15_s19 = sshll.u32 %s1704_s0, 4  ;;  %s16_s19 = int_to_ptr.hbm [resolvable:$true] %s15_s19 }
   0x3   :  { %s30_s16 = sshll.u32 %s1622_s15, 4  ;;  %s1623_s20 = smov 128   ;;  %s31_s16 = int_to_ptr.vmem [resolvable:$true] %s30_s16 }
   0x4   :  { %s1624_s21 = smov 8   ;;  %s1625_s22 = smov [#allocation2]  }
   0x5   :  { %36 = dma.hbm_to_vmem [thread:$0]  %s29_s14, 12288, %s31_s16, [#allocation6], %s1623_s20, %s1623_s20, %s1624_s21  }
   0x6   :  { %s17_s23 = sshll.u32 %s1625_s22, 4  ;;  %s1626_s24 = smov 384   ;;  %s18_s23 = int_to_ptr.vmem [resolvable:$true] %s17_s23 }
   0x7   :  { %s1627_s25 = smov 24   ;;  %s42_s27 = sshll.u32 %s1706_s2, 4  ;;  %s43_s27 = int_to_ptr.hbm [resolvable:$true] %s42_s27 }
   0x8   :  { %23 = dma.hbm_to_vmem [thread:$0]  %s16_s19, 1536, %s18_s23, [#allocation3], %s1626_s24, %s1626_s24, %s1627_s25  }
   0x9   :  { %s1628_s28 = smov [#allocation7]  }
   0xa   :  { %s44_s29 = sshll.u32 %s1628_s28, 4  ;;  %s45_s29 = int_to_ptr.vmem [resolvable:$true] %s44_s29 }
   0xb   :  { %47 = dma.hbm_to_vmem [thread:$0]  %s43_s27, 32, %s45_s29, [#allocation6]  }
   0xc   :  { %1616 = dma.done.wait [#allocation3], 1536  }
   0xd   :  { %1617 = vsyncadd [#allocation3], 4294965760 }
   0xe   :  { %1618 = dma.done.wait [#allocation6], 12320  }
   0xf   :  { %1619 = vsyncadd [#allocation6], 4294954976  ;;  %v1076_v0 = vld [vmem:[#allocation5 + $0x70] sm:$0xf]  ;;  %v1429_v1 = vld [vmem:[#allocation5 + $0x74] sm:$0xf0] }
  0x10   :  { %v1140_v2 = vld [vmem:[#allocation5 + $0xf0] sm:$0xf]  ;;  %v1077_v3 = vor.u32 %v1429_v1, %v1076_v0  ;;  %v1445_v4 = vld [vmem:[#allocation5 + $0xf4] sm:$0xf0]  ;;  %v1068_v11 = vld [vmem:[#allocation5 + $0x60] sm:$0xf] }
  0x11   :  { %v1204_v5 = vld [vmem:[#allocation5 + $0x170] sm:$0xf]  ;;  %v1461_v6 = vld [vmem:[#allocation5 + $0x174] sm:$0xf0]  ;;  %v1141_v7 = vor.u32 %v1445_v4, %v1140_v2  ;;  %v1427_v13 = vld [vmem:[#allocation5 + $0x64] sm:$0xf0] }
  0x12   :  { %v1205_v8 = vor.u32 %v1461_v6, %v1204_v5  ;;  %v1268_v9 = vld [vmem:[#allocation5 + $0x1f0] sm:$0xf]  ;;  %v1477_v10 = vld [vmem:[#allocation5 + $0x1f4] sm:$0xf0]  ;;  %714 = vmatpush.bf16.msra.mxu0 %v1077_v3  ;;  %v1132_v14 = vld [vmem:[#allocation5 + $0xe0] sm:$0xf]  ;;  %v1069_v16 = vor.u32 %v1427_v13, %v1068_v11 }
  0x13   :  { %v1269_v12 = vor.u32 %v1477_v10, %v1268_v9  ;;  %v1443_v15 = vld [vmem:[#allocation5 + $0xe4] sm:$0xf0]  ;;  %733 = vmatpush.bf16.msra.mxu1 %v1141_v7  ;;  %v1196_v18 = vld [vmem:[#allocation5 + $0x160] sm:$0xf]  ;;  %v1060_v23 = vld [vmem:[#allocation5 + $0x50] sm:$0xf] }
  0x14   :  { %752 = vmatpush.bf16.msra.mxu2 %v1205_v8  ;;  %v1133_v17 = vor.u32 %v1443_v15, %v1132_v14  ;;  %v1459_v19 = vld [vmem:[#allocation5 + $0x164] sm:$0xf0]  ;;  %v1260_v20 = vld [vmem:[#allocation5 + $0x1e0] sm:$0xf]  ;;  %v1425_v24 = vld [vmem:[#allocation5 + $0x54] sm:$0xf0] }
  0x15   :  { %771 = vmatpush.bf16.msra.mxu3 %v1269_v12  ;;  %v1197_v21 = vor.u32 %v1459_v19, %v1196_v18  ;;  %v1475_v22 = vld [vmem:[#allocation5 + $0x1e4] sm:$0xf0]  ;;  %v1124_v26 = vld [vmem:[#allocation5 + $0xd0] sm:$0xf]  ;;  %v1441_v27 = vld [vmem:[#allocation5 + $0xd4] sm:$0xf0]  ;;  %v1061_v29 = vor.u32 %v1425_v24, %v1060_v23 }
  0x16   :  { %v1261_v25 = vor.u32 %v1475_v22, %v1260_v20  ;;  %v1188_v28 = vld [vmem:[#allocation5 + $0x150] sm:$0xf]  ;;  %715 = vmatpush.bf16.msra.mxu0 %v1069_v16  ;;  %v1457_v30 = vld [vmem:[#allocation5 + $0x154] sm:$0xf0]  ;;  %v1125_v33 = vor.u32 %v1441_v27, %v1124_v26  ;;  %v1052_v35 = vld [vmem:[#allocation5 + $0x40] sm:$0xf] }
  0x17   :  { %v1252_v31 = vld [vmem:[#allocation5 + $0x1d0] sm:$0xf]  ;;  %v1473_v32 = vld [vmem:[#allocation5 + $0x1d4] sm:$0xf0]  ;;  %734 = vmatpush.bf16.msra.mxu1 %v1133_v17  ;;  %v1189_v34 = vor.u32 %v1457_v30, %v1188_v28  ;;  %v1423_v36 = vld [vmem:[#allocation5 + $0x44] sm:$0xf0] }
  0x18   :  { %753 = vmatpush.bf16.msra.mxu2 %v1197_v21  ;;  %v1116_v37 = vld [vmem:[#allocation5 + $0xc0] sm:$0xf]  ;;  %v1253_v38 = vor.u32 %v1473_v32, %v1252_v31  ;;  %v1439_v39 = vld [vmem:[#allocation5 + $0xc4] sm:$0xf0]  ;;  %v1053_v44 = vor.u32 %v1423_v36, %v1052_v35  ;;  %v1044_v47 = vld [vmem:[#allocation5 + $0x30] sm:$0xf] }
  0x19   :  { %772 = vmatpush.bf16.msra.mxu3 %v1261_v25  ;;  %v1180_v40 = vld [vmem:[#allocation5 + $0x140] sm:$0xf]  ;;  %v1455_v41 = vld [vmem:[#allocation5 + $0x144] sm:$0xf0]  ;;  %v1117_v45 = vor.u32 %v1439_v39, %v1116_v37  ;;  %v1421_v48 = vld [vmem:[#allocation5 + $0x34] sm:$0xf0] }
  0x1a   :  { %v1244_v42 = vld [vmem:[#allocation5 + $0x1c0] sm:$0xf]  ;;  %v1471_v43 = vld [vmem:[#allocation5 + $0x1c4] sm:$0xf0]  ;;  %716 = vmatpush.bf16.msra.mxu0 %v1061_v29  ;;  %v1181_v46 = vor.u32 %v1455_v41, %v1180_v40  ;;  %v1108_v49 = vld [vmem:[#allocation5 + $0xb0] sm:$0xf]  ;;  %v1045_v56 = vor.u32 %v1421_v48, %v1044_v47 }
  0x1b   :  { %735 = vmatpush.bf16.msra.mxu1 %v1125_v33  ;;  %v1245_v50 = vor.u32 %v1471_v43, %v1244_v42  ;;  %v1437_v51 = vld [vmem:[#allocation5 + $0xb4] sm:$0xf0]  ;;  %v1172_v52 = vld [vmem:[#allocation5 + $0x130] sm:$0xf]  ;;  %v1036_v59 = vld [vmem:[#allocation5 + $0x20] sm:$0xf] }
  0x1c   :  { %754 = vmatpush.bf16.msra.mxu2 %v1189_v34  ;;  %v1453_v53 = vld [vmem:[#allocation5 + $0x134] sm:$0xf0]  ;;  %v1236_v54 = vld [vmem:[#allocation5 + $0x1b0] sm:$0xf]  ;;  %v1109_v57 = vor.u32 %v1437_v51, %v1108_v49  ;;  %v1419_v60 = vld [vmem:[#allocation5 + $0x24] sm:$0xf0] }
  0x1d   :  { %773 = vmatpush.bf16.msra.mxu3 %v1253_v38  ;;  %v1469_v55 = vld [vmem:[#allocation5 + $0x1b4] sm:$0xf0]  ;;  %v1173_v58 = vor.u32 %v1453_v53, %v1172_v52  ;;  %v1100_v61 = vld [vmem:[#allocation5 + $0xa0] sm:$0xf]  ;;  %v1435_v63 = vld [vmem:[#allocation5 + $0xa4] sm:$0xf0]  ;;  %v1037_v4 = vor.u32 %v1419_v60, %v1036_v59 }
  0x1e   :  { %717 = vmatpush.bf16.msra.mxu0 %v1053_v44  ;;  %v1237_v62 = vor.u32 %v1469_v55, %v1236_v54  ;;  %v1164_v0 = vld [vmem:[#allocation5 + $0x120] sm:$0xf]  ;;  %v1451_v1 = vld [vmem:[#allocation5 + $0x124] sm:$0xf0]  ;;  %v1101_v5 = vor.u32 %v1435_v63, %v1100_v61  ;;  %v1028_v7 = vld [vmem:[#allocation5 + $0x10] sm:$0xf] }
  0x1f   :  { %736 = vmatpush.bf16.msra.mxu1 %v1117_v45  ;;  %v1228_v2 = vld [vmem:[#allocation5 + $0x1a0] sm:$0xf]  ;;  %v1467_v3 = vld [vmem:[#allocation5 + $0x1a4] sm:$0xf0]  ;;  %v1165_v6 = vor.u32 %v1451_v1, %v1164_v0  ;;  %v1417_v8 = vld [vmem:[#allocation5 + $0x14] sm:$0xf0] }
  0x20   :  { %755 = vmatpush.bf16.msra.mxu2 %v1181_v46  ;;  %v1092_v9 = vld [vmem:[#allocation5 + $0x90] sm:$0xf]  ;;  %v1229_v10 = vor.u32 %v1467_v3, %v1228_v2  ;;  %v1433_v11 = vld [vmem:[#allocation5 + $0x94] sm:$0xf0]  ;;  %v1020_v16 = vld [vmem:[#allocation5] sm:$0xf]  ;;  %v1029_v17 = vor.u32 %v1417_v8, %v1028_v7 }
  0x21   :  { %774 = vmatpush.bf16.msra.mxu3 %v1245_v50  ;;  %v1156_v12 = vld [vmem:[#allocation5 + $0x110] sm:$0xf]  ;;  %v1449_v13 = vld [vmem:[#allocation5 + $0x114] sm:$0xf0]  ;;  %v1415_v18 = vld [vmem:[#allocation5 + $0x4] sm:$0xf0]  ;;  %v1093_v21 = vor.u32 %v1433_v11, %v1092_v9 }
  0x22   :  { %718 = vmatpush.bf16.msra.mxu0 %v1045_v56  ;;  %v1220_v14 = vld [vmem:[#allocation5 + $0x190] sm:$0xf]  ;;  %v1465_v15 = vld [vmem:[#allocation5 + $0x194] sm:$0xf0]  ;;  %v1084_v19 = vld [vmem:[#allocation5 + $0x80] sm:$0xf]  ;;  %v1157_v22 = vor.u32 %v1449_v13, %v1156_v12  ;;  %v1021_v34 = vor.u32 %v1415_v18, %v1020_v16 }
  0x23   :  { %737 = vmatpush.bf16.msra.mxu1 %v1109_v57  ;;  %v1431_v20 = vld [vmem:[#allocation5 + $0x84] sm:$0xf0]  ;;  %v1148_v23 = vld [vmem:[#allocation5 + $0x100] sm:$0xf]  ;;  %v1221_v26 = vor.u32 %v1465_v15, %v1220_v14  ;;  %v1405_v29 = vld [vmem:[#allocation2 + $0x14] sm:$0xf0] }
  0x24   :  { %756 = vmatpush.bf16.msra.mxu2 %v1173_v58  ;;  %v1447_v24 = vld [vmem:[#allocation5 + $0x104] sm:$0xf0]  ;;  %v1212_v25 = vld [vmem:[#allocation5 + $0x180] sm:$0xf]  ;;  %v1402_v30 = vld [vmem:[#allocation2 + $0x4] sm:$0xf]  ;;  %v1085_v38 = vor.u32 %v1431_v20, %v1084_v19 }
  0x25   :  { %775 = vmatpush.bf16.msra.mxu3 %v1237_v62  ;;  %v1463_v27 = vld [vmem:[#allocation5 + $0x184] sm:$0xf0]  ;;  %v972_v28 = vld [vmem:[#allocation2] sm:$0xf]  ;;  %v974_v31 = vld [vmem:[#allocation2 + $0x18] sm:$0xf0]  ;;  %v1149_v39 = vor.u32 %v1447_v24, %v1148_v23 }
  0x26   :  { %719 = vmatpush.bf16.msra.mxu0 %v1037_v4  ;;  %v1428_v32 = vld [vmem:[#allocation5 + $0x74] sm:$0xf]  ;;  %v1078_v33 = vld [vmem:[#allocation5 + $0x78] sm:$0xf0]  ;;  %v980_v35 = vld [vmem:[#allocation2 + $0x8] sm:$0xf]  ;;  %v1213_v43 = vor.u32 %v1463_v27, %v1212_v25  ;;  %v1661_v48 = vor.u32 %v1405_v29, %v972_v28  ;;  %v1663_v53 = vor.u32 %v1402_v30, %v974_v31 }
  0x27   :  { %738 = vmatpush.bf16.msra.mxu1 %v1101_v5  ;;  %v1396_v36 = vld [vmem:[#allocation5 + $0x2f0] sm:$0xf]  ;;  %v1509_v37 = vld [vmem:[#allocation5 + $0x2f4] sm:$0xf0]  ;;  %v1406_v40 = vld [vmem:[#allocation2 + $0x1c] sm:$0xf0]  ;;  %v1081_v44 = vor.u32 %v1428_v32, %v1078_v33 }
  0x28   :  { %757 = vmatpush.bf16.msra.mxu2 %v1165_v6  ;;  %v1403_v41 = vld [vmem:[#allocation2 + $0xc] sm:$0xf]  ;;  %v982_v42 = vld [vmem:[#allocation2 + $0x20] sm:$0xf0]  ;;  %v1332_v45 = vld [vmem:[#allocation5 + $0x270] sm:$0xf]  ;;  %v1397_v49 = vor.u32 %v1509_v37, %v1396_v36  ;;  %v1665_v54 = vor.u32 %v1406_v40, %v980_v35 }
  0x29   :  { %776 = vmatpush.bf16.msra.mxu3 %v1229_v10  ;;  %v1493_v46 = vld [vmem:[#allocation5 + $0x274] sm:$0xf0]  ;;  %v1444_v47 = vld [vmem:[#allocation5 + $0xf4] sm:$0xf]  ;;  %v1142_v50 = vld [vmem:[#allocation5 + $0xf8] sm:$0xf0]  ;;  %v1667_v57 = vor.u32 %v1403_v41, %v982_v42 }
  0x2a   :  { %720 = vmatpush.bf16.msra.mxu0 %v1029_v17  ;;  %v1426_v51 = vld [vmem:[#allocation5 + $0x64] sm:$0xf]  ;;  %v1070_v52 = vld [vmem:[#allocation5 + $0x68] sm:$0xf0]  ;;  %v1388_v55 = vld [vmem:[#allocation5 + $0x2e0] sm:$0xf]  ;;  %v1333_v58 = vor.u32 %v1493_v46, %v1332_v45  ;;  %v1145_v59 = vor.u32 %v1444_v47, %v1142_v50 }
  0x2b   :  { %739 = vmatpush.bf16.msra.mxu1 %v1093_v21  ;;  %v1507_v56 = vld [vmem:[#allocation5 + $0x2e4] sm:$0xf0]  ;;  %v1073_v60 = vor.u32 %v1426_v51, %v1070_v52  ;;  %v1324_v61 = vld [vmem:[#allocation5 + $0x260] sm:$0xf]  ;;  %v1442_v63 = vld [vmem:[#allocation5 + $0xe4] sm:$0xf] }
  0x2c   :  { %758 = vmatpush.bf16.msra.mxu2 %v1157_v22  ;;  %v1491_v62 = vld [vmem:[#allocation5 + $0x264] sm:$0xf0]  ;;  %v1389_v0 = vor.u32 %v1507_v56, %v1388_v55  ;;  %v1134_v1 = vld [vmem:[#allocation5 + $0xe8] sm:$0xf0]  ;;  %v1424_v2 = vld [vmem:[#allocation5 + $0x54] sm:$0xf] }
  0x2d   :  { %777 = vmatpush.bf16.msra.mxu3 %v1221_v26  ;;  %v1062_v3 = vld [vmem:[#allocation5 + $0x58] sm:$0xf0]  ;;  %v1380_v4 = vld [vmem:[#allocation5 + $0x2d0] sm:$0xf]  ;;  %v1505_v5 = vld [vmem:[#allocation5 + $0x2d4] sm:$0xf0]  ;;  %v1325_v6 = vor.u32 %v1491_v62, %v1324_v61  ;;  %v1137_v7 = vor.u32 %v1442_v63, %v1134_v1 }
  0x2e   :  { %721 = vmatpush.bf16.msra.mxu0 %v1021_v34  ;;  %v1065_v8 = vor.u32 %v1424_v2, %v1062_v3  ;;  %v1316_v9 = vld [vmem:[#allocation5 + $0x250] sm:$0xf]  ;;  %v1489_v10 = vld [vmem:[#allocation5 + $0x254] sm:$0xf0]  ;;  %v1440_v11 = vld [vmem:[#allocation5 + $0xd4] sm:$0xf]  ;;  %v1381_v12 = vor.u32 %v1505_v5, %v1380_v4 }
  0x2f   :  { %740 = vmatpush.bf16.msra.mxu1 %v1085_v38  ;;  %v1126_v13 = vld [vmem:[#allocation5 + $0xd8] sm:$0xf0]  ;;  %v1422_v14 = vld [vmem:[#allocation5 + $0x44] sm:$0xf]  ;;  %v1054_v15 = vld [vmem:[#allocation5 + $0x48] sm:$0xf0]  ;;  %v1317_v18 = vor.u32 %v1489_v10, %v1316_v9 }
  0x30   :  { %759 = vmatpush.bf16.msra.mxu2 %v1149_v39  ;;  %v1372_v16 = vld [vmem:[#allocation5 + $0x2c0] sm:$0xf]  ;;  %v1503_v17 = vld [vmem:[#allocation5 + $0x2c4] sm:$0xf0]  ;;  %v1438_v21 = vld [vmem:[#allocation5 + $0xc4] sm:$0xf]  ;;  %v1129_v22 = vor.u32 %v1440_v11, %v1126_v13  ;;  %v1057_v23 = vor.u32 %v1422_v14, %v1054_v15 }
  0x31   :  { %778 = vmatpush.bf16.msra.mxu3 %v1213_v43  ;;  %722 = vmatmul.bf16.vlgmr.msra.gmra.mxu0 %v1661_v48  ;;  %v1308_v19 = vld [vmem:[#allocation5 + $0x240] sm:$0xf]  ;;  %v1487_v20 = vld [vmem:[#allocation5 + $0x244] sm:$0xf0]  ;;  %v1118_v24 = vld [vmem:[#allocation5 + $0xc8] sm:$0xf0]  ;;  %v1373_v27 = vor.u32 %v1503_v17, %v1372_v16 }
  0x32   :  { %741 = vmatmul.bf16.vlgmr.msra.gmra.mxu1 %v1663_v53  ;;  %790 = vmatpush.bf16.msrb.mxu0 %v1333_v58  ;;  %v996_v25 = vld [vmem:[#allocation2 + $0x30] sm:$0xf]  ;;  %v1411_v26 = vld [vmem:[#allocation2 + $0x44] sm:$0xf0]  ;;  %v1408_v28 = vld [vmem:[#allocation2 + $0x34] sm:$0xf]  ;;  %v1309_v35 = vor.u32 %v1487_v20, %v1308_v19  ;;  %v1121_v39 = vor.u32 %v1438_v21, %v1118_v24 }
  0x33   :  { %809 = vmatpush.bf16.msrb.mxu1 %v1397_v49  ;;  %760 = vmatmul.bf16.vlgmr.msra.gmra.mxu2 %v1665_v54  ;;  %v998_v29 = vld [vmem:[#allocation2 + $0x48] sm:$0xf0]  ;;  %v1420_v30 = vld [vmem:[#allocation5 + $0x34] sm:$0xf]  ;;  %v1046_v31 = vld [vmem:[#allocation5 + $0x38] sm:$0xf0] }
  0x34   :  { %828 = vmatpush.bf16.msrb.mxu2 %v1081_v44  ;;  %779 = vmatmul.bf16.vlgmr.msra.gmra.mxu3 %v1667_v57  ;;  %v1004_v32 = vld [vmem:[#allocation2 + $0x38] sm:$0xf]  ;;  %v1364_v33 = vld [vmem:[#allocation5 + $0x2b0] sm:$0xf]  ;;  %v1409_v37 = vld [vmem:[#allocation2 + $0x3c] sm:$0xf]  ;;  %v1049_v40 = vor.u32 %v1420_v30, %v1046_v31  ;;  %v1673_v44 = vor.u32 %v1411_v26, %v996_v25  ;;  %v1675_v50 = vor.u32 %v1408_v28, %v998_v29 }
  0x35   :  { %847 = vmatpush.bf16.msrb.mxu3 %v1145_v59  ;;  %v1501_v34 = vld [vmem:[#allocation5 + $0x2b4] sm:$0xf0]  ;;  %v1412_v36 = vld [vmem:[#allocation2 + $0x4c] sm:$0xf0]  ;;  %v1006_v38 = vld [vmem:[#allocation2 + $0x50] sm:$0xf0] }
  0x36   :  { %791 = vmatpush.bf16.msrb.mxu0 %v1325_v6  ;;  %v1300_v41 = vld [vmem:[#allocation5 + $0x230] sm:$0xf]  ;;  %v1485_v42 = vld [vmem:[#allocation5 + $0x234] sm:$0xf0]  ;;  %v1436_v43 = vld [vmem:[#allocation5 + $0xb4] sm:$0xf]  ;;  %v1365_v45 = vor.u32 %v1501_v34, %v1364_v33  ;;  %v1677_v51 = vor.u32 %v1412_v36, %v1004_v32  ;;  %v1679_v56 = vor.u32 %v1409_v37, %v1006_v38 }
  0x37   :  { %810 = vmatpush.bf16.msrb.mxu1 %v1389_v0  ;;  %v1110_v46 = vld [vmem:[#allocation5 + $0xb8] sm:$0xf0]  ;;  %v1418_v47 = vld [vmem:[#allocation5 + $0x24] sm:$0xf]  ;;  %v1038_v49 = vld [vmem:[#allocation5 + $0x28] sm:$0xf0]  ;;  %v1301_v58 = vor.u32 %v1485_v42, %v1300_v41 }
  0x38   :  { %829 = vmatpush.bf16.msrb.mxu2 %v1073_v60  ;;  %v1356_v52 = vld [vmem:[#allocation5 + $0x2a0] sm:$0xf]  ;;  %v1499_v55 = vld [vmem:[#allocation5 + $0x2a4] sm:$0xf0]  ;;  %v1113_v59 = vor.u32 %v1436_v43, %v1110_v46  ;;  %v1041_v60 = vor.u32 %v1418_v47, %v1038_v49  ;;  %v1434_v63 = vld [vmem:[#allocation5 + $0xa4] sm:$0xf] }
  0x39   :  { %848 = vmatpush.bf16.msrb.mxu3 %v1137_v7  ;;  %v1292_v61 = vld [vmem:[#allocation5 + $0x220] sm:$0xf]  ;;  %v1483_v62 = vld [vmem:[#allocation5 + $0x224] sm:$0xf0]  ;;  %v1357_v0 = vor.u32 %v1499_v55, %v1356_v52  ;;  %v1102_v1 = vld [vmem:[#allocation5 + $0xa8] sm:$0xf0] }
  0x3a   :  { %792 = vmatpush.bf16.msrb.mxu0 %v1317_v18  ;;  %v1416_v2 = vld [vmem:[#allocation5 + $0x14] sm:$0xf]  ;;  %v1030_v3 = vld [vmem:[#allocation5 + $0x18] sm:$0xf0]  ;;  %v1348_v4 = vld [vmem:[#allocation5 + $0x290] sm:$0xf]  ;;  %v1293_v6 = vor.u32 %v1483_v62, %v1292_v61 }
  0x3b   :  { %811 = vmatpush.bf16.msrb.mxu1 %v1381_v12  ;;  %v1497_v5 = vld [vmem:[#allocation5 + $0x294] sm:$0xf0]  ;;  %v1284_v7 = vld [vmem:[#allocation5 + $0x210] sm:$0xf]  ;;  %v1033_v9 = vor.u32 %v1416_v2, %v1030_v3  ;;  %v1432_v11 = vld [vmem:[#allocation5 + $0x94] sm:$0xf] }
  0x3c   :  { %830 = vmatpush.bf16.msrb.mxu2 %v1065_v8  ;;  %v1105_v8 = vor.u32 %v1434_v63, %v1102_v1  ;;  %v1481_v10 = vld [vmem:[#allocation5 + $0x214] sm:$0xf0]  ;;  %v1094_v12 = vld [vmem:[#allocation5 + $0x98] sm:$0xf0]  ;;  %v1349_v13 = vor.u32 %v1497_v5, %v1348_v4  ;;  %v1414_v14 = vld [vmem:[#allocation5 + $0x4] sm:$0xf] }
  0x3d   :  { %849 = vmatpush.bf16.msrb.mxu3 %v1129_v22  ;;  %v1022_v15 = vld [vmem:[#allocation5 + $0x8] sm:$0xf0]  ;;  %v1340_v16 = vld [vmem:[#allocation5 + $0x280] sm:$0xf]  ;;  %v1495_v17 = vld [vmem:[#allocation5 + $0x284] sm:$0xf0]  ;;  %v1285_v20 = vor.u32 %v1481_v10, %v1284_v7  ;;  %v1097_v24 = vor.u32 %v1432_v11, %v1094_v12 }
  0x3e   :  { %793 = vmatpush.bf16.msrb.mxu0 %v1309_v35  ;;  %v1492_v18 = vld [vmem:[#allocation5 + $0x274] sm:$0xf]  ;;  %v1334_v19 = vld [vmem:[#allocation5 + $0x278] sm:$0xf0]  ;;  %v1276_v21 = vld [vmem:[#allocation5 + $0x200] sm:$0xf]  ;;  %v1025_v25 = vor.u32 %v1414_v14, %v1022_v15  ;;  %v1341_v29 = vor.u32 %v1495_v17, %v1340_v16 }
  0x3f   :  { %812 = vmatpush.bf16.msrb.mxu1 %v1373_v27  ;;  %v1476_v22 = vld [vmem:[#allocation5 + $0x1f4] sm:$0xf]  ;;  %v1479_v26 = vld [vmem:[#allocation5 + $0x204] sm:$0xf0]  ;;  %v1430_v27 = vld [vmem:[#allocation5 + $0x84] sm:$0xf]  ;;  %v1337_v31 = vor.u32 %v1492_v18, %v1334_v19 }
  0x40   :  { %831 = vmatpush.bf16.msrb.mxu2 %v1057_v23  ;;  %v1270_v23 = vld [vmem:[#allocation5 + $0x1f8] sm:$0xf0]  ;;  %v1086_v28 = vld [vmem:[#allocation5 + $0x88] sm:$0xf0]  ;;  %v988_v30 = vld [vmem:[#allocation2 + $0x10] sm:$0xf] }
  0x41   :  { %850 = vmatpush.bf16.msrb.mxu3 %v1121_v39  ;;  %727 = vmatmul.bf16.gmra.mxu0 %v1673_v44  ;;  %v1460_v32 = vld [vmem:[#allocation5 + $0x174] sm:$0xf]  ;;  %v1206_v33 = vld [vmem:[#allocation5 + $0x178] sm:$0xf0]  ;;  %v1273_v35 = vor.u32 %v1476_v22, %v1270_v23  ;;  %v1490_v37 = vld [vmem:[#allocation5 + $0x264] sm:$0xf]  ;;  %v1277_v39 = vor.u32 %v1479_v26, %v1276_v21  ;;  %v1089_v43 = vor.u32 %v1430_v27, %v1086_v28 }
  0x42   :  { %746 = vmatmul.bf16.gmra.mxu1 %v1675_v50  ;;  %794 = vmatpush.bf16.msrb.mxu0 %v1301_v58  ;;  %v1508_v34 = vld [vmem:[#allocation5 + $0x2f4] sm:$0xf]  ;;  %v1398_v36 = vld [vmem:[#allocation5 + $0x2f8] sm:$0xf0]  ;;  %v1326_v38 = vld [vmem:[#allocation5 + $0x268] sm:$0xf0] }
  0x43   :  { %813 = vmatpush.bf16.msrb.mxu1 %v1365_v45  ;;  %765 = vmatmul.bf16.gmra.mxu2 %v1677_v51  ;;  %v1404_v41 = vld [vmem:[#allocation2 + $0x14] sm:$0xf]  ;;  %v990_v42 = vld [vmem:[#allocation2 + $0x28] sm:$0xf0]  ;;  %v1209_v45 = vor.u32 %v1460_v32, %v1206_v33  ;;  %v1458_v46 = vld [vmem:[#allocation5 + $0x164] sm:$0xf]  ;;  %v1401_v49 = vor.u32 %v1508_v34, %v1398_v36  ;;  %v1329_v52 = vor.u32 %v1490_v37, %v1326_v38 }
  0x44   :  { %832 = vmatpush.bf16.msrb.mxu2 %v1049_v40  ;;  %784 = vmatmul.bf16.gmra.mxu3 %v1679_v56  ;;  %v1407_v40 = vld [vmem:[#allocation2 + $0x24] sm:$0xf0]  ;;  %v1198_v47 = vld [vmem:[#allocation5 + $0x168] sm:$0xf0]  ;;  %v1474_v55 = vld [vmem:[#allocation5 + $0x1e4] sm:$0xf]  ;;  %v1687_v61 = vor.u32 %v1404_v41, %v990_v42 }
  0x45   :  { %851 = vmatpush.bf16.msrb.mxu3 %v1113_v59  ;;  %v1262_v58 = vld [vmem:[#allocation5 + $0x1e8] sm:$0xf0]  ;;  %v1506_v59 = vld [vmem:[#allocation5 + $0x2e4] sm:$0xf]  ;;  %v1488_v63 = vld [vmem:[#allocation5 + $0x254] sm:$0xf]  ;;  %v1201_v1 = vor.u32 %v1458_v46, %v1198_v47 }
  0x46   :  { %795 = vmatpush.bf16.msrb.mxu0 %v1293_v6  ;;  %v1390_v62 = vld [vmem:[#allocation5 + $0x2e8] sm:$0xf0]  ;;  %v1265_v2 = vor.u32 %v1474_v55, %v1262_v58  ;;  %v1456_v3 = vld [vmem:[#allocation5 + $0x154] sm:$0xf]  ;;  %v1190_v4 = vld [vmem:[#allocation5 + $0x158] sm:$0xf0] }
  0x47   :  { %814 = vmatpush.bf16.msrb.mxu1 %v1357_v0  ;;  %v1318_v0 = vld [vmem:[#allocation5 + $0x258] sm:$0xf0]  ;;  %v1393_v5 = vor.u32 %v1506_v59, %v1390_v62  ;;  %v1472_v7 = vld [vmem:[#allocation5 + $0x1d4] sm:$0xf]  ;;  %v1486_v11 = vld [vmem:[#allocation5 + $0x244] sm:$0xf] }
  0x48   :  { %833 = vmatpush.bf16.msrb.mxu2 %v1041_v60  ;;  %v1685_v60 = vor.u32 %v1407_v40, %v988_v30  ;;  %v1321_v6 = vor.u32 %v1488_v63, %v1318_v0  ;;  %v1382_v10 = vld [vmem:[#allocation5 + $0x2d8] sm:$0xf0]  ;;  %v1310_v12 = vld [vmem:[#allocation5 + $0x248] sm:$0xf0]  ;;  %v1454_v15 = vld [vmem:[#allocation5 + $0x144] sm:$0xf] }
  0x49   :  { %852 = vmatpush.bf16.msrb.mxu3 %v1105_v8  ;;  %v1254_v8 = vld [vmem:[#allocation5 + $0x1d8] sm:$0xf0]  ;;  %v1182_v16 = vld [vmem:[#allocation5 + $0x148] sm:$0xf0]  ;;  %v1313_v18 = vor.u32 %v1486_v11, %v1310_v12  ;;  %v1470_v19 = vld [vmem:[#allocation5 + $0x1c4] sm:$0xf] }
  0x4a   :  { %796 = vmatpush.bf16.msrb.mxu0 %v1285_v20  ;;  %v1257_v14 = vor.u32 %v1472_v7, %v1254_v8  ;;  %v1246_v20 = vld [vmem:[#allocation5 + $0x1c8] sm:$0xf0]  ;;  %v1502_v21 = vld [vmem:[#allocation5 + $0x2c4] sm:$0xf]  ;;  %v1484_v23 = vld [vmem:[#allocation5 + $0x234] sm:$0xf] }
  0x4b   :  { %815 = vmatpush.bf16.msrb.mxu1 %v1349_v13  ;;  %v1193_v13 = vor.u32 %v1456_v3, %v1190_v4  ;;  %v1374_v22 = vld [vmem:[#allocation5 + $0x2c8] sm:$0xf0]  ;;  %v1174_v26 = vld [vmem:[#allocation5 + $0x138] sm:$0xf0]  ;;  %v1012_v28 = vld [vmem:[#allocation2 + $0x40] sm:$0xf] }
  0x4c   :  { %834 = vmatpush.bf16.msrb.mxu2 %v1033_v9  ;;  %v1504_v9 = vld [vmem:[#allocation5 + $0x2d4] sm:$0xf]  ;;  %v1377_v27 = vor.u32 %v1502_v21, %v1374_v22  ;;  %v1366_v33 = vld [vmem:[#allocation5 + $0x2b8] sm:$0xf0]  ;;  %v1482_v34 = vld [vmem:[#allocation5 + $0x224] sm:$0xf] }
  0x4d   :  { %853 = vmatpush.bf16.msrb.mxu3 %v1097_v24  ;;  %v1385_v17 = vor.u32 %v1504_v9, %v1382_v10  ;;  %v1302_v24 = vld [vmem:[#allocation5 + $0x238] sm:$0xf0]  ;;  %v1468_v30 = vld [vmem:[#allocation5 + $0x1b4] sm:$0xf]  ;;  %v1413_v36 = vld [vmem:[#allocation2 + $0x54] sm:$0xf0] }
  0x4e   :  { %797 = vmatpush.bf16.msrb.mxu0 %v1277_v39  ;;  %v1500_v32 = vld [vmem:[#allocation5 + $0x2b4] sm:$0xf]  ;;  %v1410_v37 = vld [vmem:[#allocation2 + $0x44] sm:$0xf]  ;;  %v1014_v38 = vld [vmem:[#allocation2 + $0x58] sm:$0xf0] }
  0x4f   :  { %816 = vmatpush.bf16.msrb.mxu1 %v1341_v29  ;;  %v1305_v29 = vor.u32 %v1484_v23, %v1302_v24  ;;  %v1450_v41 = vld [vmem:[#allocation5 + $0x124] sm:$0xf]  ;;  %v1166_v42 = vld [vmem:[#allocation5 + $0x128] sm:$0xf0]  ;;  %v1017_v55 = vor.u32 %v1410_v37, %v1014_v38  ;;  %v1480_v59 = vld [vmem:[#allocation5 + $0x214] sm:$0xf] }
  0x50   :  { %835 = vmatpush.bf16.msrb.mxu2 %v1025_v25  ;;  %v1452_v25 = vld [vmem:[#allocation5 + $0x134] sm:$0xf]  ;;  %v1466_v46 = vld [vmem:[#allocation5 + $0x1a4] sm:$0xf]  ;;  %v1230_v47 = vld [vmem:[#allocation5 + $0x1a8] sm:$0xf0]  ;;  %v1169_v63 = vor.u32 %v1450_v41, %v1166_v42 }
  0x51   :  { %854 = vmatpush.bf16.msrb.mxu3 %v1089_v43  ;;  %798 = vmatmul.bf16.vlgmr.msrb.gmra.mxu0 %v1685_v60  ;;  %v1177_v39 = vor.u32 %v1452_v25, %v1174_v26  ;;  %v1369_v43 = vor.u32 %v1500_v32, %v1366_v33  ;;  %v1358_v58 = vld [vmem:[#allocation5 + $0x2a8] sm:$0xf0]  ;;  %v1286_v62 = vld [vmem:[#allocation5 + $0x218] sm:$0xf0]  ;;  %v1233_v0 = vor.u32 %v1466_v46, %v1230_v47  ;;  %v1496_v7 = vld [vmem:[#allocation5 + $0x294] sm:$0xf] }
  0x52   :  { %866 = vmatpush.bf16.msra.mxu0 %v1209_v45  ;;  %817 = vmatmul.bf16.vlgmr.msrb.gmra.mxu1 %v1687_v61  ;;  %v1289_v4 = vor.u32 %v1480_v59, %v1286_v62  ;;  %v1350_v8 = vld [vmem:[#allocation5 + $0x298] sm:$0xf0]  ;;  %v1478_v9 = vld [vmem:[#allocation5 + $0x204] sm:$0xf]  ;;  %v1278_v10 = vld [vmem:[#allocation5 + $0x208] sm:$0xf0] }
  0x53   :  { %885 = vmatpush.bf16.msra.mxu1 %v1273_v35  ;;  %836 = vmatmul.bf16.vlgmr.msrb.gmra.mxu2 %v1661_v48  ;;  %v1185_v48 = vor.u32 %v1454_v15, %v1182_v16  ;;  %v1294_v35 = vld [vmem:[#allocation5 + $0x228] sm:$0xf0]  ;;  %v1281_v15 = vor.u32 %v1478_v9, %v1278_v10  ;;  %v168_v26 = vld [vmem:[#allocation7] sm:$0x3]  ;;  %s1629_s0 = smov [#allocation8]   ;;  %s956_s5 = sshll.u32 %s1707_s3, 4  ;;  %s957_s5 = int_to_ptr.hbm [resolvable:$true] %s956_s5 }
  0x54   :  { %904 = vmatpush.bf16.msra.mxu2 %v1337_v31  ;;  %855 = vmatmul.bf16.vlgmr.msrb.gmra.mxu3 %v1663_v53  ;;  %v1249_v53 = vor.u32 %v1470_v19, %v1246_v20  ;;  %v1238_v31 = vld [vmem:[#allocation5 + $0x1b8] sm:$0xf0]  ;;  %v1297_v45 = vor.u32 %v1482_v34, %v1294_v35  ;;  %v1150_v16 = vld [vmem:[#allocation5 + $0x108] sm:$0xf0]  ;;  %v1494_v19 = vld [vmem:[#allocation5 + $0x284] sm:$0xf] }
  0x55   :  { %923 = vmatpush.bf16.msra.mxu3 %v1401_v49  ;;  %v1241_v40 = vor.u32 %v1468_v30, %v1238_v31  ;;  %v1498_v49 = vld [vmem:[#allocation5 + $0x2a4] sm:$0xf]  ;;  %v1342_v20 = vld [vmem:[#allocation5 + $0x288] sm:$0xf0]  ;;  %s954_s2 = sshll.u32 %s1629_s0, 4  ;;  %s1630_s6 = smov 256   ;;  %s955_s2 = int_to_ptr.vmem [resolvable:$true] %s954_s2 }
  0x56   :  { %867 = vmatpush.bf16.msra.mxu0 %v1201_v1  ;;  %v1448_v1 = vld [vmem:[#allocation5 + $0x114] sm:$0xf]  ;;  %v1361_v3 = vor.u32 %v1498_v49, %v1358_v58  ;;  %s1631_s7 = smov 16  }
  0x57   :  { %886 = vmatpush.bf16.msra.mxu1 %v1265_v2  ;;  %v1158_v2 = vld [vmem:[#allocation5 + $0x118] sm:$0xf0] }
  0x58   :  { %905 = vmatpush.bf16.msra.mxu2 %v1329_v52  ;;  %v1013_v52 = vor.u32 %v1413_v36, %v1012_v28  ;;  %v1161_v11 = vor.u32 %v1448_v1, %v1158_v2 }
  0x59   :  { %924 = vmatpush.bf16.msra.mxu3 %v1393_v5  ;;  %v1464_v5 = vld [vmem:[#allocation5 + $0x194] sm:$0xf] }
  0x5a   :  { %868 = vmatpush.bf16.msra.mxu0 %v1193_v13  ;;  %v1446_v13 = vld [vmem:[#allocation5 + $0x104] sm:$0xf] }
  0x5b   :  { %887 = vmatpush.bf16.msra.mxu1 %v1257_v14  ;;  %v1353_v14 = vor.u32 %v1496_v7, %v1350_v8  ;;  %v1153_v21 = vor.u32 %v1446_v13, %v1150_v16 }
  0x5c   :  { %906 = vmatpush.bf16.msra.mxu2 %v1321_v6  ;;  %v1222_v6 = vld [vmem:[#allocation5 + $0x198] sm:$0xf0] }
  0x5d   :  { %925 = vmatpush.bf16.msra.mxu3 %v1385_v17  ;;  %v1225_v12 = vor.u32 %v1464_v5, %v1222_v6  ;;  %v1462_v17 = vld [vmem:[#allocation5 + $0x184] sm:$0xf] }
  0x5e   :  { %869 = vmatpush.bf16.msra.mxu0 %v1185_v48 }
  0x5f   :  { %888 = vmatpush.bf16.msra.mxu1 %v1249_v53 }
  0x60   :  { %907 = vmatpush.bf16.msra.mxu2 %v1313_v18  ;;  %v1214_v18 = vld [vmem:[#allocation5 + $0x188] sm:$0xf0] }
  0x61   :  { %926 = vmatpush.bf16.msra.mxu3 %v1377_v27  ;;  %803 = vmatmul.bf16.gmra.mxu0 %v1013_v52  ;;  %v170_v27 = vperm.slane %v168_v26, 0 }
  0x62   :  { %870 = vmatpush.bf16.msra.mxu0 %v1177_v39  ;;  %822 = vmatmul.bf16.gmra.mxu1 %v1017_v55 }
  0x63   :  { %889 = vmatpush.bf16.msra.mxu1 %v1241_v40  ;;  %841 = vmatmul.bf16.gmra.mxu2 %v1673_v44  ;;  %v1217_v44 = vor.u32 %v1462_v17, %v1214_v18 }
  0x64   :  { %908 = vmatpush.bf16.msra.mxu2 %v1305_v29  ;;  %860 = vmatmul.bf16.gmra.mxu3 %v1675_v50  ;;  %v1345_v50 = vor.u32 %v1494_v19, %v1342_v20 }
  0x65   :  { %927 = vmatpush.bf16.msra.mxu3 %v1369_v43 }
  0x66   :  { %871 = vmatpush.bf16.msra.mxu0 %v1169_v63 }
  0x67   :  { %890 = vmatpush.bf16.msra.mxu1 %v1233_v0 }
  0x68   :  { %909 = vmatpush.bf16.msra.mxu2 %v1297_v45 }
  0x69   :  { %928 = vmatpush.bf16.msra.mxu3 %v1361_v3 }
  0x6a   :  { %872 = vmatpush.bf16.msra.mxu0 %v1161_v11 }
  0x6b   :  { %891 = vmatpush.bf16.msra.mxu1 %v1225_v12  ;;  %v171_v12 = vperm.slane %v168_v26, 1 }
  0x6c   :  { %910 = vmatpush.bf16.msra.mxu2 %v1289_v4 }
  0x6d   :  { %929 = vmatpush.bf16.msra.mxu3 %v1353_v14 }
  0x6e   :  { %873 = vmatpush.bf16.msra.mxu0 %v1153_v21 }
  0x6f   :  { %892 = vmatpush.bf16.msra.mxu1 %v1217_v44 }
  0x70   :  { %911 = vmatpush.bf16.msra.mxu2 %v1281_v15 }
  0x71   :  { %930 = vmatpush.bf16.msra.mxu3 %v1345_v50  ;;  %874 = vmatmul.bf16.vlgmr.msra.gmra.mxu0 %v1665_v54 }
  0x72   :  { %893 = vmatmul.bf16.vlgmr.msra.gmra.mxu1 %v1667_v57 }
  0x73   :  { %912 = vmatmul.bf16.vlgmr.msra.gmra.mxu2 %v1685_v60 }
  0x74   :  { %931 = vmatmul.bf16.vlgmr.msra.gmra.mxu3 %v1687_v61 }
  0x81   :  { %879 = vmatmul.bf16.gmra.mxu0 %v1677_v51 }
  0x82   :  { %898 = vmatmul.bf16.gmra.mxu1 %v1679_v56 }
  0x83   :  { %917 = vmatmul.bf16.gmra.mxu2 %v1013_v52 }
  0x84   :  { %936 = vmatmul.bf16.gmra.mxu3 %v1017_v55 }
  0xae   :  { %v723_v22 = vpop.f32.mrf.mxu0 }
  0xaf   :  { %v742_v23 = vpop.f32.mrf.mxu1  ;;  %v724_v29 = vadd.f32 %v723_v22, %v170_v27 }
  0xb1   :  { %v743_v30 = vadd.f32 %v742_v23, %v724_v29 }
  0xb6   :  { %v761_v24 = vpop.f32.mrf.mxu2  ;;  %v725_v53 = vpop.f32.mrf.mxu0 }
  0xb7   :  { %v780_v48 = vpop.f32.mrf.mxu3  ;;  %v744_v25 = vpop.f32.mrf.mxu1  ;;  %v762_v32 = vadd.f32 %v761_v24, %v743_v30  ;;  %v726_v33 = vadd.f32 %v725_v53, %v170_v27 }
  0xb9   :  { %v781_v35 = vadd.f32 %v780_v48, %v762_v32  ;;  %v745_v39 = vadd.f32 %v744_v25, %v726_v33 }
  0xbe   :  { %v763_v54 = vpop.f32.mrf.mxu2  ;;  %v728_v28 = vpop.f32.mrf.mxu0 }
  0xbf   :  { %v782_v57 = vpop.f32.mrf.mxu3  ;;  %v747_v60 = vpop.f32.mrf.mxu1  ;;  %v764_v41 = vadd.f32 %v763_v54, %v745_v39  ;;  %v729_v42 = vadd.f32 %v728_v28, %v170_v27 }
  0xc1   :  { %v783_v45 = vadd.f32 %v782_v57, %v764_v41  ;;  %v748_v46 = vadd.f32 %v747_v60, %v729_v42 }
  0xc6   :  { %v766_v61 = vpop.f32.mrf.mxu2  ;;  %v730_v31 = vpop.f32.mrf.mxu0 }
  0xc7   :  { %v785_v51 = vpop.f32.mrf.mxu3  ;;  %v749_v56 = vpop.f32.mrf.mxu1  ;;  %v767_v59 = vadd.f32 %v766_v61, %v748_v46  ;;  %v731_v63 = vadd.f32 %v730_v31, %v170_v27 }
  0xc9   :  { %v786_v0 = vadd.f32 %v785_v51, %v767_v59  ;;  %v750_v5 = vadd.f32 %v749_v56, %v731_v63 }
  0xce   :  { %v768_v34 = vpop.f32.mrf.mxu2  ;;  %v799_v37 = vpop.f32.mrf.mxu0 }
  0xcf   :  { %v787_v36 = vpop.f32.mrf.mxu3  ;;  %v818_v38 = vpop.f32.mrf.mxu1  ;;  %v800_v40 = vadd.f32 %v799_v37, %v781_v35  ;;  %v769_v7 = vadd.f32 %v768_v34, %v750_v5 }
  0xd1   :  { %v819_v43 = vadd.f32 %v818_v38, %v800_v40  ;;  %v788_v9 = vadd.f32 %v787_v36, %v769_v7 }
  0xd3   :  { %942 = vst [vmem:[#allocation8] sm:$0xff] %v819_v43 }
  0xd6   :  { %v837_v47 = vpop.f32.mrf.mxu2  ;;  %v801_v52 = vpop.f32.mrf.mxu0 }
  0xd7   :  { %v856_v49 = vpop.f32.mrf.mxu3  ;;  %v820_v55 = vpop.f32.mrf.mxu1  ;;  %v802_v58 = vadd.f32 %v801_v52, %v783_v45  ;;  %v838_v17 = vadd.f32 %v837_v47, %v171_v12 }
  0xd9   :  { %v821_v62 = vadd.f32 %v820_v55, %v802_v58  ;;  %v857_v20 = vadd.f32 %v856_v49, %v838_v17 }
  0xdb   :  { %944 = vst [vmem:[#allocation8 + $0x10] sm:$0xff] %v821_v62 }
  0xde   :  { %v839_v1 = vpop.f32.mrf.mxu2  ;;  %v804_v3 = vpop.f32.mrf.mxu0 }
  0xdf   :  { %v858_v2 = vpop.f32.mrf.mxu3  ;;  %v823_v4 = vpop.f32.mrf.mxu1  ;;  %v805_v6 = vadd.f32 %v804_v3, %v786_v0  ;;  %v840_v22 = vadd.f32 %v839_v1, %v171_v12 }
  0xe1   :  { %v824_v8 = vadd.f32 %v823_v4, %v805_v6  ;;  %v859_v53 = vadd.f32 %v858_v2, %v840_v22 }
  0xe3   :  { %946 = vst [vmem:[#allocation8 + $0x20] sm:$0xff] %v824_v8 }
  0xe6   :  { %v842_v10 = vpop.f32.mrf.mxu2  ;;  %v806_v13 = vpop.f32.mrf.mxu0 }
  0xe7   :  { %v861_v11 = vpop.f32.mrf.mxu3  ;;  %v825_v14 = vpop.f32.mrf.mxu1  ;;  %v807_v15 = vadd.f32 %v806_v13, %v788_v9  ;;  %v843_v28 = vadd.f32 %v842_v10, %v171_v12 }
  0xe9   :  { %v826_v16 = vadd.f32 %v825_v14, %v807_v15  ;;  %v862_v30 = vadd.f32 %v861_v11, %v843_v28 }
  0xeb   :  { %948 = vst [vmem:[#allocation8 + $0x30] sm:$0xff] %v826_v16 }
  0xee   :  { %v844_v18 = vpop.f32.mrf.mxu2  ;;  %v875_v21 = vpop.f32.mrf.mxu0 }
  0xef   :  { %v863_v19 = vpop.f32.mrf.mxu3  ;;  %v894_v44 = vpop.f32.mrf.mxu1  ;;  %v876_v50 = vadd.f32 %v875_v21, %v857_v20  ;;  %v845_v34 = vadd.f32 %v844_v18, %v171_v12 }
  0xf1   :  { %v895_v23 = vadd.f32 %v894_v44, %v876_v50  ;;  %v864_v38 = vadd.f32 %v863_v19, %v845_v34 }
  0xf6   :  { %v913_v24 = vpop.f32.mrf.mxu2  ;;  %v877_v54 = vpop.f32.mrf.mxu0 }
  0xf7   :  { %v932_v48 = vpop.f32.mrf.mxu3  ;;  %v914_v25 = vadd.f32 %v913_v24, %v895_v23  ;;  %v896_v26 = vpop.f32.mrf.mxu1  ;;  %v878_v57 = vadd.f32 %v877_v54, %v859_v53 }
  0xf9   :  { %v933_v27 = vadd.f32 %v932_v48, %v914_v25  ;;  %v897_v60 = vadd.f32 %v896_v26, %v878_v57 }
  0xfb   :  { %943 = vst [vmem:[#allocation8 + $0x8] sm:$0xff] %v933_v27 }
  0xfe   :  { %v915_v29 = vpop.f32.mrf.mxu2  ;;  %v880_v31 = vpop.f32.mrf.mxu0 }
  0xff   :  { %v934_v61 = vpop.f32.mrf.mxu3  ;;  %v916_v51 = vadd.f32 %v915_v29, %v897_v60  ;;  %v881_v32 = vadd.f32 %v880_v31, %v862_v30  ;;  %v899_v33 = vpop.f32.mrf.mxu1 }
 0x101   :  { %v935_v56 = vadd.f32 %v934_v61, %v916_v51  ;;  %v900_v35 = vadd.f32 %v899_v33, %v881_v32 }
 0x103   :  { %945 = vst [vmem:[#allocation8 + $0x18] sm:$0xff] %v935_v56 }
 0x106   :  { %v918_v36 = vpop.f32.mrf.mxu2  ;;  %v882_v40 = vpop.f32.mrf.mxu0 }
 0x107   :  { %v937_v37 = vpop.f32.mrf.mxu3  ;;  %v919_v39 = vadd.f32 %v918_v36, %v900_v35  ;;  %v883_v42 = vadd.f32 %v882_v40, %v864_v38  ;;  %v901_v43 = vpop.f32.mrf.mxu1 }
 0x109   :  { %v938_v41 = vadd.f32 %v937_v37, %v919_v39  ;;  %v902_v45 = vadd.f32 %v901_v43, %v883_v42 }
 0x10b   :  { %947 = vst [vmem:[#allocation8 + $0x28] sm:$0xff] %v938_v41 }
 0x10e   :  { %v920_v46 = vpop.f32.mrf.mxu2 }
 0x10f   :  { %v921_v47 = vadd.f32 %v920_v46, %v902_v45  ;;  %v939_v49 = vpop.f32.mrf.mxu3 }
 0x111   :  { %v940_v52 = vadd.f32 %v939_v49, %v921_v47 }
 0x113   :  { %949 = vst [vmem:[#allocation8 + $0x38] sm:$0xff] %v940_v52 }
 0x114   :  { %962 = dma.vmem_to_hbm [thread:$0]  %s955_s2, 1024, %s957_s5, [#allocation4], %s1630_s6, %s1630_s6, %s1631_s7  }
 0x115   :  { %1620 = dma.done.wait [#allocation4], 1024  }
 0x116   :  { %1621 = vsyncadd [#allocation4], 4294966272 }
 0x117   :  { %967 = vsyncpa [#allocation3], 1 }
 0x118   :  { %968 = vsyncpa [#allocation6], 1 }
 0x119   :  { %969 = vsyncpa [#allocation4], 1 }

</bundles_post_ra>
